<compile_context>
chip_gen: v6e
topology: v6e:2x2x1
jax: 0.10.0
libtpu: 0.0.40
codegen_flags: <defaults>
</compile_context>

<pallas_src>
import functools
import random

import jax
import jax.numpy as jnp
from jax.experimental import pallas as pl
from jax.experimental.pallas import tpu as pltpu


# -----------------------------------------------------------------------------
# Standalone forward: the positional-embedding slice as ONE HBM->HBM DMA.
# -----------------------------------------------------------------------------
def _pos_slice_dma_kernel(table_ref, out_ref, sem, *, start, sl):
    # table_ref : full (seq_len, model_dim) embedding table, left in HBM (pl.ANY)
    # out_ref   : (sl, model_dim) output, left in HBM (pl.ANY)
    # `start`/`sl` are trace-time static -> single static-slice DMA, no VMEM staging.
    cp = pltpu.make_async_copy(table_ref.at[pl.ds(start, sl)], out_ref, sem)
    cp.start()
    cp.wait()


def _resolve_start(sl, seq_len, relative, py_rng):
    if not relative:
        return 0
    # Matches torch: start = random.randint(sl, seq_len) - sl (host Python RNG).
    # TODO(synk): under jax.jit this start is baked in at trace time; a faithful
    # per-call random window would need `start` as a traced scalar (scalar prefetch).
    rng = py_rng if py_rng is not None else random
    return rng.randint(sl, seq_len) - sl


def learned_position_embeddings_fwd(x, emb_weight, *, relative=False, seq_len=None,
                                    py_rng=None):
    """Pallas equivalent of LearnedPositionEmbeddings.forward -> (sl, model_dim)."""
    if seq_len is None:
        seq_len = emb_weight.shape[0]
    model_dim = emb_weight.shape[1]
    sl = x.shape[1]
    assert sl <= seq_len, (
        f"Sequence length {sl} is greater than the maximum sequence length {seq_len}")

    start = _resolve_start(sl, seq_len, relative, py_rng)

    return pl.pallas_call(
        functools.partial(_pos_slice_dma_kernel, start=start, sl=sl),
        out_shape=jax.ShapeDtypeStruct((sl, model_dim), emb_weight.dtype),
        in_specs=[pl.BlockSpec(memory_space=pl.ANY)],
        out_specs=pl.BlockSpec(memory_space=pl.ANY),
        scratch_shapes=[pltpu.SemaphoreType.DMA],
    )(emb_weight)


# -----------------------------------------------------------------------------
# Fused consumer path: out = tok + pos_emb (where this kernel actually earns its
# keep by removing one full read+write of the activation).
# -----------------------------------------------------------------------------
_SUBLANE_PACK = {1: 32, 2: 16, 4: 8}   # rows per packed sublane tile, by itemsize


def _vmem_capacity_bytes():
    try:
        return int(pltpu.get_tpu_info().vmem_capacity_bytes)
    except Exception:
        return 64 * 1024 * 1024        # v7x per-TC floor: safe on every generation


def _pick_row_tile(sl, model_dim, dtype, *, pipelined_tiles=6,
                   target_tile_bytes=2 * 1024 * 1024):
    """Row tile: dtype-packed, ~1-2 MiB per tile (85%+ of HBM roofline), capped by a
    generation-aware VMEM budget, and >=2 row-steps for multi-MiB copies (v7x)."""
    itemsize = jnp.dtype(dtype).itemsize
    pack = _SUBLANE_PACK.get(itemsize, 8)
    row_bytes = model_dim * itemsize
    # Per-tile budget: ~1/4 of this generation's VMEM split over the pipelined tiles.
    budget_tile_bytes = max(pack * row_bytes,
                            (_vmem_capacity_bytes() // 4) // pipelined_tiles)
    tile_bytes = min(target_tile_bytes, budget_tile_bytes)
    tr = max(pack, (tile_bytes // row_bytes) // pack * pack)
    tr_need = pack * pl.cdiv(sl, pack)          # never bigger than the output needs
    tr = int(min(tr, tr_need))
    # Keep >=2 row-blocks when the copy is HBM-bound-sized so ("parallel", ...) can
    # shard rows across v7x's two TensorCores (no-op on single-TC v5e/v6e).
    if pl.cdiv(sl, tr) == 1 and sl * row_bytes > (4 * 1024 * 1024):
        tr = max(pack, pl.cdiv(pl.cdiv(sl, 2), pack) * pack)
    return int(tr)


def _fused_add_kernel(tok_ref, emb_ref, out_ref):
    # tok_ref: (1, TR, model_dim), emb_ref: (TR, model_dim) -> broadcast add.
    out_ref[...] = tok_ref[...].astype(out_ref.dtype) + emb_ref[...].astype(out_ref.dtype)


def learned_position_embeddings_fused_add(tok, emb_weight, *, relative=False,
                                          seq_len=None, py_rng=None):
    """Fused `tok + positional_embedding` for tok of shape (batch, sl, model_dim)."""
    if seq_len is None:
        seq_len = emb_weight.shape[0]
    batch, sl, model_dim = tok.shape
    assert model_dim == emb_weight.shape[1]
    assert sl <= seq_len, (
        f"Sequence length {sl} is greater than the maximum sequence length {seq_len}")

    start = _resolve_start(sl, seq_len, relative, py_rng)
    # start == 0 (non-relative, the common case): full table, zero pre-slice traffic.
    # start != 0: slice exactly sl rows (not seq_len - start) before the call.
    # TODO(synk): fold a nonzero static `start` into the emb row indexing (manual
    # make_async_copy on a pl.ANY emb ref) to remove this sl-row pre-slice as well.
    table = emb_weight if start == 0 else emb_weight[start:start + sl]

    out_dtype = jnp.result_type(tok.dtype, emb_weight.dtype)
    tr = _pick_row_tile(sl, model_dim, out_dtype)
    n_row_blocks = pl.cdiv(sl, tr)
    row_bytes = model_dim * jnp.dtype(out_dtype).itemsize
    # 3 operands x 2 pipeline buffers plus headroom, consistent with the tile budget.
    vmem_limit = int(min(max(8 * tr * row_bytes, 16 * 1024 * 1024),
                         _vmem_capacity_bytes() // 2))

    return pl.pallas_call(
        _fused_add_kernel,
        out_shape=jax.ShapeDtypeStruct((batch, sl, model_dim), out_dtype),
        grid=(batch, n_row_blocks),
        in_specs=[pl.BlockSpec((1, tr, model_dim), lambda b, i: (b, i, 0)),
                  pl.BlockSpec((tr, model_dim), lambda b, i: (i, 0))],
        out_specs=pl.BlockSpec((1, tr, model_dim), lambda b, i: (b, i, 0)),
        compiler_params=pltpu.CompilerParams(
            dimension_semantics=("parallel", "parallel"),
            vmem_limit_bytes=vmem_limit,
        ),
    )(tok, table)


if __name__ == "__main__":
    # Small shapes consistent with the module.
    seq_len = 32      # maximum sequence length (embedding rows)
    model_dim = 128   # embedding dim (lane-dense last dim)
    batch = 2
    sl = 16           # actual sequence length of x

    key = jax.random.PRNGKey(0)
    k_emb, k_x, k_tok = jax.random.split(key, 3)

    # nn.Embedding(seq_len, model_dim); weight ~ N(0, 0.02)
    emb_weight = (0.02 * jax.random.normal(k_emb, (seq_len, model_dim))).astype(jnp.float32)

    # x: (batch, sl) token ids (only its shape[1] matters for this module)
    x = jax.random.randint(k_x, (batch, sl), 0, 100, dtype=jnp.int32)

    # --- non-relative path: emb.weight[0:sl] ---
    out = jax.block_until_ready(
        learned_position_embeddings_fwd(x, emb_weight, relative=False, seq_len=seq_len))
    ref = emb_weight[:sl]
    assert out.shape == (sl, model_dim), out.shape
    assert out.dtype == emb_weight.dtype, out.dtype
    assert jnp.allclose(out, ref), "mismatch vs reference lookup (relative=False)"

    # --- relative path (deterministic seeded host RNG) ---
    start = random.Random(0).randint(sl, seq_len) - sl
    out_rel = jax.block_until_ready(
        learned_position_embeddings_fwd(x, emb_weight, relative=True, seq_len=seq_len,
                                        py_rng=random.Random(0)))
    ref_rel = emb_weight[start:start + sl]
    assert out_rel.shape == (sl, model_dim), out_rel.shape
    assert jnp.allclose(out_rel, ref_rel), "mismatch vs reference lookup (relative=True)"

    # --- fused consumer path: tok + pos_emb (review's highest-value change) ---
    tok = jax.random.normal(k_tok, (batch, sl, model_dim), dtype=jnp.float32)
    out_fused = jax.block_until_ready(
        learned_position_embeddings_fused_add(tok, emb_weight, relative=False,
                                              seq_len=seq_len))
    ref_fused = tok + emb_weight[:sl][None]
    assert out_fused.shape == (batch, sl, model_dim), out_fused.shape
    assert jnp.allclose(out_fused, ref_fused), "mismatch vs reference fused add"

    print("KERNEL_OK")
</pallas_src>

<mosaic_0001>
module attributes {stable_mosaic.version = 11 : i64} {
  func.func @_pos_slice_dma_kernel(%arg0: memref<32x128xf32, #tpu.memory_space<any>>, %arg1: memref<16x128xf32, #tpu.memory_space<any>>, %arg2: memref<!tpu.dma_semaphore, #tpu.memory_space<semaphore_mem>>) attributes {dimension_semantics = [], scalar_prefetch = 0 : i64, scratch_operands = 1 : i64, tpu.core_type = #tpu.core_type<tc>} {
    %c0_i32 = arith.constant 0 : i32
    %c0_i32_0 = arith.constant 0 : i32
    %0 = tpu.memref_slice %arg0[%c0_i32, %c0_i32_0] : memref<32x128xf32, #tpu.memory_space<any>> -> memref<16x128xf32, #tpu.memory_space<any>>
    tpu.enqueue_dma source(%0 : memref<16x128xf32, #tpu.memory_space<any>>) target(%arg1 : memref<16x128xf32, #tpu.memory_space<any>>) target_semaphore(%arg2 : memref<!tpu.dma_semaphore, #tpu.memory_space<semaphore_mem>>)
    %c0_i32_1 = arith.constant 0 : i32
    %c0_i32_2 = arith.constant 0 : i32
    %1 = tpu.memref_slice %arg0[%c0_i32_1, %c0_i32_2] : memref<32x128xf32, #tpu.memory_space<any>> -> memref<16x128xf32, #tpu.memory_space<any>>
    tpu.wait_dma2 semaphore(%arg2 : memref<!tpu.dma_semaphore, #tpu.memory_space<semaphore_mem>>) src(%1 : memref<16x128xf32, #tpu.memory_space<any>>) dst(%arg1 : memref<16x128xf32, #tpu.memory_space<any>>)
    return
  }
}

</mosaic_0001>

<bundles_post_ra>
// kernel: tpu_custom_call.1
= control target key start
LH: loop header
LB: loop body
LE: loop exit
PB: predicated region body
PF: predicated region fallthrough
CT: control target
= control target key end

     0   :  { %s28_s6 = smov [#allocation2]   ;;  %s29_s7 = smov 131072   ;;  %s47_s0 = inlined_call_operand.hbm [shape: f32[32,128], index: 0, kind: input, shape index: {}]   ;;  %s48_s1 = inlined_call_operand.hbm [shape: f32[16,128], index: 1, kind: output, shape index: {}]  }
   0x1   :  { %s30_s8 = smov 0  }
   0x2   :  { %12 = dma.general %s47_s0, 256, %s48_s1, %s28_s6, %s29_s7, [#allocation4], %s30_s8, 0  }
   0x3   :  { %26 = dma.done.wait [#allocation2], 256 }
   0x4   :  { %27 = vsyncadd [#allocation2], 4294967040 }
   0x5   :  { %16 = vsyncmov [#allocation2] }
   0x8   :  { %s17_s13 = vpop.sfrf %16 }
   0x9   :  { %p22_p0 = scmp.ne.s32.totalorder %s17_s13, 0 }
   0xb   :  { %21 = shalt.err (%p22_p0)  }

</bundles_post_ra>
